<compile_context>
chip_gen: v6e
topology: v6e:2x2x1
jax: 0.10.0
libtpu: 0.0.40
codegen_flags: <defaults>
</compile_context>

<pallas_src>
import functools

import jax
import jax.numpy as jnp
from jax.experimental import pallas as pl
from jax.experimental.pallas import tpu as pltpu


# ----------------------------- kernel helpers ------------------------------

def _conv_taps(x_f32, w, *, K, dil, pad, cdt):
    """Fused K-tap 'same' conv of one sample: (L, CP) x (K*CP, CP) -> (L, CP) f32."""
    L, CP = x_f32.shape
    if pad > 0:
        z = jnp.zeros((pad, CP), x_f32.dtype)
        xp = jnp.concatenate([z, x_f32, z], axis=0)          # only 2*pad zero rows
    else:
        xp = x_f32
    slices = [xp[k * dil:k * dil + L, :] for k in range(K)]  # static shifted views
    cols = slices[0] if K == 1 else jnp.concatenate(slices, axis=1)  # (L, K*CP)
    # single MXU matmul over the fused contraction dim, f32 accumulation
    return jnp.dot(cols.astype(cdt), w, preferred_element_type=jnp.float32)


def _stats(y):
    """Per-channel sum and sum-of-squares of one (L, CP) tile -> (2, CP)."""
    return jnp.concatenate([jnp.sum(y, axis=0, keepdims=True),
                            jnp.sum(y * y, axis=0, keepdims=True)], axis=0)


# -------------------------------- kernels ----------------------------------

def conv_stats_kernel(x_ref, w_ref, y_ref, s_ref, *, K, dil, pad, cdt):
    # x_ref: (1, L, CP) f32; w_ref: (K*CP, CP) cdt
    y = _conv_taps(x_ref[0], w_ref[...], K=K, dil=dil, pad=pad, cdt=cdt)
    y_ref[0] = y
    s_ref[0] = _stats(y)


def bn_relu_conv_stats_kernel(y1_ref, aff_ref, w_ref, y2_ref, s_ref,
                              *, K, dil, pad, cdt):
    # BN as a folded per-channel FMA (scale/shift precomputed), then ReLU, conv2
    h = jnp.maximum(y1_ref[0] * aff_ref[0:1, :] + aff_ref[1:2, :], 0.0)
    y2 = _conv_taps(h, w_ref[...], K=K, dil=dil, pad=pad, cdt=cdt)
    y2_ref[0] = y2
    s_ref[0] = _stats(y2)


def bn_residual_relu_kernel(y2_ref, aff_ref, x_ref, o_ref):
    o_ref[0] = jnp.maximum(
        y2_ref[0] * aff_ref[0:1, :] + aff_ref[1:2, :] + x_ref[0], 0.0)


# -------------------------------- wrapper -----------------------------------

def _bn_affine(stats, gamma, beta, count, eps):
    """Fold train-mode BN into per-channel (scale, shift) from summed stats."""
    tot = jnp.sum(stats, axis=0)                              # (2, CP)
    mean = tot[0] / count
    var = jnp.maximum(tot[1] / count - mean * mean, 0.0)      # biased, one pass
    scale = gamma * jax.lax.rsqrt(var + eps)
    shift = beta - mean * scale
    return jnp.stack([scale, shift], axis=0)                  # (2, CP)


@functools.partial(jax.jit, static_argnames=("dilation", "eps", "use_bf16"))
def residual_block_1d(x_ncl, w1, b1, g1, be1, w2, b2, g2, be2,
                      *, dilation=1, eps=1e-5, use_bf16=True):
    """x_ncl: (N, C, L) f32.  w*: (C_out, C_in, K) PyTorch Conv1d layout."""
    # Conv biases are cancelled exactly by train-mode BN mean subtraction:
    # (y + b) - mean(y + b) == y - mean(y), var unchanged.  Drop them.
    del b1, b2

    N, C, L = x_ncl.shape
    K = w1.shape[-1]
    pad = (K - 1) // 2 * dilation
    CP = ((C + 127) // 128) * 128               # lane-dense channel dimension
    cdt = jnp.bfloat16 if use_bf16 else jnp.float32

    # channels-last + zero-pad channels to CP (padded channels stay exactly 0)
    x_nlc = jnp.transpose(x_ncl, (0, 2, 1)).astype(jnp.float32)
    if CP != C:
        x_nlc = jnp.pad(x_nlc, ((0, 0), (0, 0), (0, CP - C)))

    def fuse_w(w):
        wt = jnp.transpose(w, (2, 1, 0)).astype(jnp.float32)  # (K, Cin, Cout)
        if CP != C:
            wt = jnp.pad(wt, ((0, 0), (0, CP - C), (0, CP - C)))
        return wt.reshape(K * CP, CP).astype(cdt)             # im2col weight

    def pad_c(p):
        p = p.astype(jnp.float32)
        return jnp.pad(p, (0, CP - C)) if CP != C else p

    W1, W2 = fuse_w(w1), fuse_w(w2)
    g1p, be1p, g2p, be2p = pad_c(g1), pad_c(be1), pad_c(g2), pad_c(be2)

    cparams = pltpu.CompilerParams(dimension_semantics=("parallel",),
                                   vmem_limit_bytes=32 * 1024 * 1024)
    row_spec = pl.BlockSpec((1, L, CP), lambda b: (b, 0, 0))
    stat_spec = pl.BlockSpec((1, 2, CP), lambda b: (b, 0, 0))
    w_spec = pl.BlockSpec((K * CP, CP), lambda b: (0, 0))
    aff_spec = pl.BlockSpec((2, CP), lambda b: (0, 0))
    act_shape = jax.ShapeDtypeStruct((N, L, CP), jnp.float32)
    stat_shape = jax.ShapeDtypeStruct((N, 2, CP), jnp.float32)

    # pass 1: conv1 + per-tile stats (tiles = batch samples -> halos stay internal)
    y1, s1 = pl.pallas_call(
        functools.partial(conv_stats_kernel, K=K, dil=dilation, pad=pad, cdt=cdt),
        grid=(N,),
        in_specs=[row_spec, w_spec],
        out_specs=(row_spec, stat_spec),
        out_shape=(act_shape, stat_shape),
        compiler_params=cparams,
    )(x_nlc, W1)
    aff1 = _bn_affine(s1, g1p, be1p, N * L, eps)

    # pass 2: BN1 FMA + ReLU + conv2 + per-tile stats
    y2, s2 = pl.pallas_call(
        functools.partial(bn_relu_conv_stats_kernel, K=K, dil=dilation, pad=pad, cdt=cdt),
        grid=(N,),
        in_specs=[row_spec, aff_spec, w_spec],
        out_specs=(row_spec, stat_spec),
        out_shape=(act_shape, stat_shape),
        compiler_params=cparams,
    )(y1, aff1, W2)
    aff2 = _bn_affine(s2, g2p, be2p, N * L, eps)

    # pass 3: BN2 FMA + residual + ReLU
    out_nlc = pl.pallas_call(
        bn_residual_relu_kernel,
        grid=(N,),
        in_specs=[row_spec, aff_spec, row_spec],
        out_specs=row_spec,
        out_shape=act_shape,
        compiler_params=cparams,
    )(y2, aff2, x_nlc)

    out_nlc = out_nlc[:, :, :C]
    return jnp.transpose(out_nlc, (0, 2, 1))                  # back to NCL


# --------------------------- pure-JAX reference ------------------------------

def reference(x, w1, b1, g1, be1, w2, b2, g2, be2, *, dilation=1, eps=1e-5):
    """Mirrors the PyTorch forward (train-mode BN, conv with bias)."""
    def conv(x, w, b):
        pad = (w.shape[-1] - 1) // 2 * dilation
        y = jax.lax.conv_general_dilated(
            x, w, window_strides=(1,), padding=[(pad, pad)],
            rhs_dilation=(dilation,), dimension_numbers=("NCH", "OIH", "NCH"))
        return y + b[None, :, None]

    def bn(x, g, be):
        mean = jnp.mean(x, axis=(0, 2), keepdims=True)
        var = jnp.mean((x - mean) ** 2, axis=(0, 2), keepdims=True)
        return (x - mean) * jax.lax.rsqrt(var + eps) * g[None, :, None] + be[None, :, None]

    h = jax.nn.relu(bn(conv(x, w1, b1), g1, be1))
    h = bn(conv(h, w2, b2), g2, be2)
    return jax.nn.relu(h + x)


if __name__ == "__main__":
    N, C, L, K, dilation = 2, 8, 16, 3, 1

    key = jax.random.PRNGKey(0)
    keys = jax.random.split(key, 9)
    x = jax.random.normal(keys[0], (N, C, L), jnp.float32)

    w1 = 0.3 * jax.random.normal(keys[1], (C, C, K), jnp.float32)   # Conv1d (Cout,Cin,K)
    b1 = 0.1 * jax.random.normal(keys[2], (C,), jnp.float32)
    w2 = 0.3 * jax.random.normal(keys[3], (C, C, K), jnp.float32)
    b2 = 0.1 * jax.random.normal(keys[4], (C,), jnp.float32)
    g1 = 1.0 + 0.1 * jax.random.normal(keys[5], (C,), jnp.float32)  # BN gamma
    be1 = 0.1 * jax.random.normal(keys[6], (C,), jnp.float32)       # BN beta
    g2 = 1.0 + 0.1 * jax.random.normal(keys[7], (C,), jnp.float32)
    be2 = 0.1 * jax.random.normal(keys[8], (C,), jnp.float32)

    ref = reference(x, w1, b1, g1, be1, w2, b2, g2, be2, dilation=dilation)

    # exact-math path (f32 MXU operands) -- tight check
    out_f32 = jax.block_until_ready(
        residual_block_1d(x, w1, b1, g1, be1, w2, b2, g2, be2,
                          dilation=dilation, use_bf16=False))
    assert out_f32.shape == (N, C, L)
    err32 = jnp.max(jnp.abs(out_f32 - ref))
    assert jnp.allclose(out_f32, ref, atol=1e-4, rtol=1e-4), \
        f"f32 path max abs err = {err32}"

    # fast path (bf16 MXU operands, f32 accumulation) -- looser check
    out_bf16 = jax.block_until_ready(
        residual_block_1d(x, w1, b1, g1, be1, w2, b2, g2, be2,
                          dilation=dilation, use_bf16=True))
    err16 = jnp.max(jnp.abs(out_bf16 - ref))
    assert jnp.allclose(out_bf16, ref, atol=5e-2, rtol=5e-2), \
        f"bf16 path max abs err = {err16}"

    print("KERNEL_OK")
</pallas_src>

<mosaic_0001>
module attributes {stable_mosaic.version = 11 : i64} {
  func.func @conv_stats_kernel(%arg0: i32, %arg1: memref<1x16x128xf32, #tpu.memory_space<vmem>>, %arg2: memref<384x128xf32, #tpu.memory_space<vmem>>, %arg3: memref<1x16x128xf32, #tpu.memory_space<vmem>>, %arg4: memref<1x2x128xf32, #tpu.memory_space<vmem>>) attributes {dimension_semantics = [#tpu.dimension_semantics<parallel>], iteration_bounds = array<i64: 2>, scalar_prefetch = 0 : i64, scratch_operands = 0 : i64, tpu.core_type = #tpu.core_type<tc>, window_params = [{transform_indices = @transform_0, window_bounds = array<i64: 1, 16, 128>}, {pipeline_mode = #tpu.pipeline_mode<synchronous>, transform_indices = @transform_1, window_bounds = array<i64: 384, 128>}, {transform_indices = @transform_2, window_bounds = array<i64: 1, 16, 128>}, {transform_indices = @transform_3, window_bounds = array<i64: 1, 2, 128>}]} {
    %c0 = arith.constant 0 : index
    %c0_0 = arith.constant 0 : index
    %c0_1 = arith.constant 0 : index
    %0 = vector.load %arg1[%c0, %c0_0, %c0_1] : memref<1x16x128xf32, #tpu.memory_space<vmem>>, vector<1x16x128xf32>
    %1 = vector.shape_cast %0 : vector<1x16x128xf32> to vector<16x128xf32>
    %c0_2 = arith.constant 0 : index
    %c0_3 = arith.constant 0 : index
    %2 = vector.load %arg2[%c0_2, %c0_3] : memref<384x128xf32, #tpu.memory_space<vmem>>, vector<384x128xf32>
    %cst = arith.constant 0.000000e+00 : f32
    %3 = vector.broadcast %cst : f32 to vector<1x128xf32>
    %4 = tpu.concatenate %3, %1, %3 in 0 : vector<1x128xf32>, vector<16x128xf32>, vector<1x128xf32> -> vector<18x128xf32>
    %5 = vector.extract_strided_slice %4 {offsets = [0, 0], sizes = [16, 128], strides = [1, 1]} : vector<18x128xf32> to vector<16x128xf32>
    %6 = vector.extract_strided_slice %4 {offsets = [1, 0], sizes = [16, 128], strides = [1, 1]} : vector<18x128xf32> to vector<16x128xf32>
    %7 = vector.extract_strided_slice %4 {offsets = [2, 0], sizes = [16, 128], strides = [1, 1]} : vector<18x128xf32> to vector<16x128xf32>
    %8 = tpu.concatenate %5, %6, %7 in 1 : vector<16x128xf32>, vector<16x128xf32>, vector<16x128xf32> -> vector<16x384xf32>
    %cst_4 = arith.constant dense<0.000000e+00> : vector<16x128xf32>
    %9 = tpu.matmul %8, %2, %cst_4 {dimension_numbers = #tpu.dot_dimension_numbers<[1], [0], [0], [1], [0, 0, 1, 1], [], []>} : vector<16x384xf32>, vector<384x128xf32>, vector<16x128xf32> -> vector<16x128xf32>
    %c0_5 = arith.constant 0 : index
    %c0_6 = arith.constant 0 : index
    %c0_7 = arith.constant 0 : index
    %10 = vector.load %arg3[%c0_5, %c0_6, %c0_7] : memref<1x16x128xf32, #tpu.memory_space<vmem>>, vector<1x16x128xf32>
    %11 = vector.shape_cast %10 : vector<1x16x128xf32> to vector<16x128xf32>
    %12 = vector.shape_cast %9 : vector<16x128xf32> to vector<1x16x128xf32>
    tpu.vector_store %arg3[%c0_5, %c0_6, %c0_7], %12 {strides = array<i32>} : memref<1x16x128xf32, #tpu.memory_space<vmem>>, vector<1x16x128xf32>,
    %cst_8 = arith.constant dense<0.000000e+00> : vector<128xf32>
    %13 = vector.multi_reduction <add>, %9, %cst_8 [0] : vector<16x128xf32> to vector<128xf32>
    %14 = vector.shape_cast %13 : vector<128xf32> to vector<1x128xf32>
    %15 = arith.mulf %9, %9 : vector<16x128xf32>
    %cst_9 = arith.constant dense<0.000000e+00> : vector<128xf32>
    %16 = vector.multi_reduction <add>, %15, %cst_9 [0] : vector<16x128xf32> to vector<128xf32>
    %17 = vector.shape_cast %16 : vector<128xf32> to vector<1x128xf32>
    %18 = tpu.concatenate %14, %17 in 0 : vector<1x128xf32>, vector<1x128xf32> -> vector<2x128xf32>
    %c0_10 = arith.constant 0 : index
    %c0_11 = arith.constant 0 : index
    %c0_12 = arith.constant 0 : index
    %19 = vector.load %arg4[%c0_10, %c0_11, %c0_12] : memref<1x2x128xf32, #tpu.memory_space<vmem>>, vector<1x2x128xf32>
    %20 = vector.shape_cast %19 : vector<1x2x128xf32> to vector<2x128xf32>
    %21 = vector.shape_cast %18 : vector<2x128xf32> to vector<1x2x128xf32>
    tpu.vector_store %arg4[%c0_10, %c0_11, %c0_12], %21 {strides = array<i32>} : memref<1x2x128xf32, #tpu.memory_space<vmem>>, vector<1x2x128xf32>,
    return
  }
  func.func @transform_0(%arg0: i32) -> (i32, i32, i32) {
    %c0_i32 = arith.constant 0 : i32
    %c0_i32_0 = arith.constant 0 : i32
    %c0_i32_1 = arith.constant 0 : i32
    return %arg0, %c0_i32, %c0_i32_0 : i32, i32, i32
  }
  func.func @transform_1(%arg0: i32) -> (i32, i32) {
    %c0_i32 = arith.constant 0 : i32
    %c0_i32_0 = arith.constant 0 : i32
    %c0_i32_1 = arith.constant 0 : i32
    return %c0_i32, %c0_i32_0 : i32, i32
  }
  func.func @transform_2(%arg0: i32) -> (i32, i32, i32) {
    %c0_i32 = arith.constant 0 : i32
    %c0_i32_0 = arith.constant 0 : i32
    %c0_i32_1 = arith.constant 0 : i32
    return %arg0, %c0_i32, %c0_i32_0 : i32, i32, i32
  }
  func.func @transform_3(%arg0: i32) -> (i32, i32, i32) {
    %c0_i32 = arith.constant 0 : i32
    %c0_i32_0 = arith.constant 0 : i32
    %c0_i32_1 = arith.constant 0 : i32
    return %arg0, %c0_i32, %c0_i32_0 : i32, i32, i32
  }
}

module attributes {stable_mosaic.version = 11 : i64} {
  func.func @bn_residual_relu_kernel(%arg0: i32, %arg1: memref<1x16x128xf32, #tpu.memory_space<vmem>>, %arg2: memref<2x128xf32, #tpu.memory_space<vmem>>, %arg3: memref<1x16x128xf32, #tpu.memory_space<vmem>>, %arg4: memref<1x16x128xf32, #tpu.memory_space<vmem>>) attributes {dimension_semantics = [#tpu.dimension_semantics<parallel>], iteration_bounds = array<i64: 2>, scalar_prefetch = 0 : i64, scratch_operands = 0 : i64, tpu.core_type = #tpu.core_type<tc>, window_params = [{transform_indices = @transform_0, window_bounds = array<i64: 1, 16, 128>}, {pipeline_mode = #tpu.pipeline_mode<synchronous>, transform_indices = @transform_1, window_bounds = array<i64: 2, 128>}, {transform_indices = @transform_2, window_bounds = array<i64: 1, 16, 128>}, {transform_indices = @transform_3, window_bounds = array<i64: 1, 16, 128>}]} {
    %c0 = arith.constant 0 : index
    %c0_0 = arith.constant 0 : index
    %c0_1 = arith.constant 0 : index
    %0 = vector.load %arg1[%c0, %c0_0, %c0_1] : memref<1x16x128xf32, #tpu.memory_space<vmem>>, vector<1x16x128xf32>
    %1 = vector.shape_cast %0 : vector<1x16x128xf32> to vector<16x128xf32>
    %c0_2 = arith.constant 0 : index
    %c0_3 = arith.constant 0 : index
    %2 = vector.load %arg2[%c0_2, %c0_3] : memref<2x128xf32, #tpu.memory_space<vmem>>, vector<1x128xf32>
    %3 = vector.broadcast %2 : vector<1x128xf32> to vector<16x128xf32>
    %4 = arith.mulf %1, %3 : vector<16x128xf32>
    %c1 = arith.constant 1 : index
    %c0_4 = arith.constant 0 : index
    %5 = vector.load %arg2[%c1, %c0_4] : memref<2x128xf32, #tpu.memory_space<vmem>>, vector<1x128xf32>
    %6 = vector.broadcast %5 : vector<1x128xf32> to vector<16x128xf32>
    %7 = arith.addf %4, %6 : vector<16x128xf32>
    %c0_5 = arith.constant 0 : index
    %c0_6 = arith.constant 0 : index
    %c0_7 = arith.constant 0 : index
    %8 = vector.load %arg3[%c0_5, %c0_6, %c0_7] : memref<1x16x128xf32, #tpu.memory_space<vmem>>, vector<1x16x128xf32>
    %9 = vector.shape_cast %8 : vector<1x16x128xf32> to vector<16x128xf32>
    %10 = arith.addf %7, %9 : vector<16x128xf32>
    %cst = arith.constant 0.000000e+00 : f32
    %11 = vector.broadcast %cst : f32 to vector<16x128xf32>
    %12 = arith.maximumf %10, %11 : vector<16x128xf32>
    %c0_8 = arith.constant 0 : index
    %c0_9 = arith.constant 0 : index
    %c0_10 = arith.constant 0 : index
    %13 = vector.load %arg4[%c0_8, %c0_9, %c0_10] : memref<1x16x128xf32, #tpu.memory_space<vmem>>, vector<1x16x128xf32>
    %14 = vector.shape_cast %13 : vector<1x16x128xf32> to vector<16x128xf32>
    %15 = vector.shape_cast %12 : vector<16x128xf32> to vector<1x16x128xf32>
    tpu.vector_store %arg4[%c0_8, %c0_9, %c0_10], %15 {strides = array<i32>} : memref<1x16x128xf32, #tpu.memory_space<vmem>>, vector<1x16x128xf32>,
    return
  }
  func.func @transform_0(%arg0: i32) -> (i32, i32, i32) {
    %c0_i32 = arith.constant 0 : i32
    %c0_i32_0 = arith.constant 0 : i32
    %c0_i32_1 = arith.constant 0 : i32
    return %arg0, %c0_i32, %c0_i32_0 : i32, i32, i32
  }
  func.func @transform_1(%arg0: i32) -> (i32, i32) {
    %c0_i32 = arith.constant 0 : i32
    %c0_i32_0 = arith.constant 0 : i32
    %c0_i32_1 = arith.constant 0 : i32
    return %c0_i32, %c0_i32_0 : i32, i32
  }
  func.func @transform_2(%arg0: i32) -> (i32, i32, i32) {
    %c0_i32 = arith.constant 0 : i32
    %c0_i32_0 = arith.constant 0 : i32
    %c0_i32_1 = arith.constant 0 : i32
    return %arg0, %c0_i32, %c0_i32_0 : i32, i32, i32
  }
  func.func @transform_3(%arg0: i32) -> (i32, i32, i32) {
    %c0_i32 = arith.constant 0 : i32
    %c0_i32_0 = arith.constant 0 : i32
    %c0_i32_1 = arith.constant 0 : i32
    return %arg0, %c0_i32, %c0_i32_0 : i32, i32, i32
  }
}

module attributes {stable_mosaic.version = 11 : i64} {
  func.func @bn_relu_conv_stats_kernel(%arg0: i32, %arg1: memref<1x16x128xf32, #tpu.memory_space<vmem>>, %arg2: memref<2x128xf32, #tpu.memory_space<vmem>>, %arg3: memref<384x128xf32, #tpu.memory_space<vmem>>, %arg4: memref<1x16x128xf32, #tpu.memory_space<vmem>>, %arg5: memref<1x2x128xf32, #tpu.memory_space<vmem>>) attributes {dimension_semantics = [#tpu.dimension_semantics<parallel>], iteration_bounds = array<i64: 2>, scalar_prefetch = 0 : i64, scratch_operands = 0 : i64, tpu.core_type = #tpu.core_type<tc>, window_params = [{transform_indices = @transform_0, window_bounds = array<i64: 1, 16, 128>}, {pipeline_mode = #tpu.pipeline_mode<synchronous>, transform_indices = @transform_1, window_bounds = array<i64: 2, 128>}, {pipeline_mode = #tpu.pipeline_mode<synchronous>, transform_indices = @transform_2, window_bounds = array<i64: 384, 128>}, {transform_indices = @transform_3, window_bounds = array<i64: 1, 16, 128>}, {transform_indices = @transform_4, window_bounds = array<i64: 1, 2, 128>}]} {
    %c0 = arith.constant 0 : index
    %c0_0 = arith.constant 0 : index
    %c0_1 = arith.constant 0 : index
    %0 = vector.load %arg1[%c0, %c0_0, %c0_1] : memref<1x16x128xf32, #tpu.memory_space<vmem>>, vector<1x16x128xf32>
    %1 = vector.shape_cast %0 : vector<1x16x128xf32> to vector<16x128xf32>
    %c0_2 = arith.constant 0 : index
    %c0_3 = arith.constant 0 : index
    %2 = vector.load %arg2[%c0_2, %c0_3] : memref<2x128xf32, #tpu.memory_space<vmem>>, vector<1x128xf32>
    %3 = vector.broadcast %2 : vector<1x128xf32> to vector<16x128xf32>
    %4 = arith.mulf %1, %3 : vector<16x128xf32>
    %c1 = arith.constant 1 : index
    %c0_4 = arith.constant 0 : index
    %5 = vector.load %arg2[%c1, %c0_4] : memref<2x128xf32, #tpu.memory_space<vmem>>, vector<1x128xf32>
    %6 = vector.broadcast %5 : vector<1x128xf32> to vector<16x128xf32>
    %7 = arith.addf %4, %6 : vector<16x128xf32>
    %cst = arith.constant 0.000000e+00 : f32
    %8 = vector.broadcast %cst : f32 to vector<16x128xf32>
    %9 = arith.maximumf %7, %8 : vector<16x128xf32>
    %c0_5 = arith.constant 0 : index
    %c0_6 = arith.constant 0 : index
    %10 = vector.load %arg3[%c0_5, %c0_6] : memref<384x128xf32, #tpu.memory_space<vmem>>, vector<384x128xf32>
    %cst_7 = arith.constant 0.000000e+00 : f32
    %11 = vector.broadcast %cst_7 : f32 to vector<1x128xf32>
    %12 = tpu.concatenate %11, %9, %11 in 0 : vector<1x128xf32>, vector<16x128xf32>, vector<1x128xf32> -> vector<18x128xf32>
    %13 = vector.extract_strided_slice %12 {offsets = [0, 0], sizes = [16, 128], strides = [1, 1]} : vector<18x128xf32> to vector<16x128xf32>
    %14 = vector.extract_strided_slice %12 {offsets = [1, 0], sizes = [16, 128], strides = [1, 1]} : vector<18x128xf32> to vector<16x128xf32>
    %15 = vector.extract_strided_slice %12 {offsets = [2, 0], sizes = [16, 128], strides = [1, 1]} : vector<18x128xf32> to vector<16x128xf32>
    %16 = tpu.concatenate %13, %14, %15 in 1 : vector<16x128xf32>, vector<16x128xf32>, vector<16x128xf32> -> vector<16x384xf32>
    %cst_8 = arith.constant dense<0.000000e+00> : vector<16x128xf32>
    %17 = tpu.matmul %16, %10, %cst_8 {dimension_numbers = #tpu.dot_dimension_numbers<[1], [0], [0], [1], [0, 0, 1, 1], [], []>} : vector<16x384xf32>, vector<384x128xf32>, vector<16x128xf32> -> vector<16x128xf32>
    %c0_9 = arith.constant 0 : index
    %c0_10 = arith.constant 0 : index
    %c0_11 = arith.constant 0 : index
    %18 = vector.load %arg4[%c0_9, %c0_10, %c0_11] : memref<1x16x128xf32, #tpu.memory_space<vmem>>, vector<1x16x128xf32>
    %19 = vector.shape_cast %18 : vector<1x16x128xf32> to vector<16x128xf32>
    %20 = vector.shape_cast %17 : vector<16x128xf32> to vector<1x16x128xf32>
    tpu.vector_store %arg4[%c0_9, %c0_10, %c0_11], %20 {strides = array<i32>} : memref<1x16x128xf32, #tpu.memory_space<vmem>>, vector<1x16x128xf32>,
    %cst_12 = arith.constant dense<0.000000e+00> : vector<128xf32>
    %21 = vector.multi_reduction <add>, %17, %cst_12 [0] : vector<16x128xf32> to vector<128xf32>
    %22 = vector.shape_cast %21 : vector<128xf32> to vector<1x128xf32>
    %23 = arith.mulf %17, %17 : vector<16x128xf32>
    %cst_13 = arith.constant dense<0.000000e+00> : vector<128xf32>
    %24 = vector.multi_reduction <add>, %23, %cst_13 [0] : vector<16x128xf32> to vector<128xf32>
    %25 = vector.shape_cast %24 : vector<128xf32> to vector<1x128xf32>
    %26 = tpu.concatenate %22, %25 in 0 : vector<1x128xf32>, vector<1x128xf32> -> vector<2x128xf32>
    %c0_14 = arith.constant 0 : index
    %c0_15 = arith.constant 0 : index
    %c0_16 = arith.constant 0 : index
    %27 = vector.load %arg5[%c0_14, %c0_15, %c0_16] : memref<1x2x128xf32, #tpu.memory_space<vmem>>, vector<1x2x128xf32>
    %28 = vector.shape_cast %27 : vector<1x2x128xf32> to vector<2x128xf32>
    %29 = vector.shape_cast %26 : vector<2x128xf32> to vector<1x2x128xf32>
    tpu.vector_store %arg5[%c0_14, %c0_15, %c0_16], %29 {strides = array<i32>} : memref<1x2x128xf32, #tpu.memory_space<vmem>>, vector<1x2x128xf32>,
    return
  }
  func.func @transform_0(%arg0: i32) -> (i32, i32, i32) {
    %c0_i32 = arith.constant 0 : i32
    %c0_i32_0 = arith.constant 0 : i32
    %c0_i32_1 = arith.constant 0 : i32
    return %arg0, %c0_i32, %c0_i32_0 : i32, i32, i32
  }
  func.func @transform_1(%arg0: i32) -> (i32, i32) {
    %c0_i32 = arith.constant 0 : i32
    %c0_i32_0 = arith.constant 0 : i32
    %c0_i32_1 = arith.constant 0 : i32
    return %c0_i32, %c0_i32_0 : i32, i32
  }
  func.func @transform_2(%arg0: i32) -> (i32, i32) {
    %c0_i32 = arith.constant 0 : i32
    %c0_i32_0 = arith.constant 0 : i32
    %c0_i32_1 = arith.constant 0 : i32
    return %c0_i32, %c0_i32_0 : i32, i32
  }
  func.func @transform_3(%arg0: i32) -> (i32, i32, i32) {
    %c0_i32 = arith.constant 0 : i32
    %c0_i32_0 = arith.constant 0 : i32
    %c0_i32_1 = arith.constant 0 : i32
    return %arg0, %c0_i32, %c0_i32_0 : i32, i32, i32
  }
  func.func @transform_4(%arg0: i32) -> (i32, i32, i32) {
    %c0_i32 = arith.constant 0 : i32
    %c0_i32_0 = arith.constant 0 : i32
    %c0_i32_1 = arith.constant 0 : i32
    return %arg0, %c0_i32, %c0_i32_0 : i32, i32, i32
  }
}

</mosaic_0001>

<bundles_post_ra>
// kernel: residual_block_1d.5
= control target key start
LH: loop header
LB: loop body
LE: loop exit
PB: predicated region body
PF: predicated region fallthrough
CT: control target
= control target key end

     0   :  { %s336_s12 = smov 0   ;;  %s362_s0 = inlined_call_operand.vmem [shape: f32[2,16,128], index: 0, kind: input, shape index: {}]   ;;  %s363_s1 = inlined_call_operand.vmem [shape: f32[2,128], index: 1, kind: input, shape index: {}]   ;;  %s364_s2 = inlined_call_operand.vmem [shape: f32[2,16,128], index: 2, kind: input, shape index: {}]   ;;  %s365_s3 = inlined_call_operand.vmem [shape: f32[2,16,128], index: 3, kind: output, shape index: {}]  }
   0x1 LB: > { %s282_s13 = sadd.s32 4294967295, %s314_s12   ;;  %p286_p0 = scmp.ge.s32.totalorder %s314_s12, 1  ;;  %s314_s12 = sphi %s336_s12, %s13_s12  }
   0x2   : > { %p147_p1 = scmp.lt.s32.totalorder %s314_s12, 3 }
   0x4   : > { %p148_p2 = pnand %p286_p0, %p147_p1 }
   0x5   : > { %p176_p3 = scmp.lt.s32.totalorder (!%p148_p2), %s282_s13, 1 }
   0x6   : > { %151 = sbr.rel (%p148_p2) target bundleno = 24 (0x18), region = 32 }
   0xb   : > { %s367_s13 = smov (!%p176_p3, %s282_s13), 1  ;;  %v293_v0 = vld [vmem:[%s363_s1] ss:$0 sm:$0xff]  ;;  %v294_v3 = vld [vmem:[%s363_s1 + $0x1] ss:$0 sm:$0xff] }
   0xc   : > { %s297_s14 = sshll.u32 %s367_s13, 4 }
   0xd   : > { %s180_s19 = scalar_lea.vmem %s362_s0, %s297_s14  ;;  %s185_s22 = scalar_lea.vmem %s364_s2, %s297_s14 }
   0xe   : > { %v191_v1 = vld [vmem:[%s180_s19] sm:$0xff]  ;;  %v192_v2 = vld [vmem:[%s180_s19 + $0x8] sm:$0xff]  ;;  %s190_s27 = scalar_lea.vmem %s365_s3, %s297_s14 }
   0xf   : > { %v198_v4 = vmul.f32 %v293_v0, %v191_v1  ;;  %v199_v5 = vmul.f32 %v293_v0, %v192_v2  ;;  %v207_v6 = vld [vmem:[%s185_s22] sm:$0xff]  ;;  %v208_v7 = vld [vmem:[%s185_s22 + $0x8] sm:$0xff] }
  0x11   : > { %v205_v8 = vadd.f32 %v294_v3, %v198_v4  ;;  %v206_v9 = vadd.f32 %v294_v3, %v199_v5 }
  0x13   : > { %v209_v10 = vadd.f32 %v207_v6, %v205_v8  ;;  %v210_v11 = vadd.f32 %v208_v7, %v206_v9 }
  0x15   : > { %v211_v12 = vmax.f32 %v209_v10, 0.0  ;;  %v212_v13 = vmax.f32 %v210_v11, 0.0 }
  0x17   : > { %213 = vst [vmem:[%s190_s27] sm:$0xff] %v211_v12  ;;  %214 = vst [vmem:[%s190_s27 + $0x8] sm:$0xff] %v212_v13 }
  0x18 PF: > { %s13_s12 = sadd.s32 1, %s314_s12  }
  0x19   : > { %p10_p4 = scmp.ge.s32.totalorder %s13_s12, 4  }
  0x1b   :  { %12 = sbr.rel (!%p10_p4) target bundleno = 1 (0x1), region = 65 }

// kernel: residual_block_1d.4
= control target key start
LH: loop header
LB: loop body
LE: loop exit
PB: predicated region body
PF: predicated region fallthrough
CT: control target
= control target key end

     0   :  { %s710_s15 = smov 0   ;;  %s901_s0 = inlined_call_operand.vmem [shape: f32[2,16,128], index: 0, kind: input, shape index: {}]   ;;  %s902_s1 = inlined_call_operand.vmem [shape: f32[2,128], index: 1, kind: input, shape index: {}]   ;;  %s903_s2 = inlined_call_operand.vmem [shape: f32[384,128], index: 2, kind: input, shape index: {}]   ;;  %s904_s3 = inlined_call_operand.vmem [shape: f32[2,16,128], index: 3, kind: output, shape index: {0}]   ;;  %s905_s4 = inlined_call_operand.vmem [shape: f32[2,2,128], index: 4, kind: output, shape index: {1}]  }
   0x1 LB: > { %s560_s16 = sadd.s32 4294967295, %s683_s15   ;;  %p564_p0 = scmp.ge.s32.totalorder %s683_s15, 1  ;;  %s683_s15 = sphi %s710_s15, %s15_s15  }
   0x2   : > { %p165_p1 = scmp.lt.s32.totalorder %s683_s15, 3 }
   0x4   : > { %p166_p2 = pnand %p564_p0, %p165_p1 }
   0x5   : > { %p733_p3 = scmp.lt.s32.totalorder (!%p166_p2), %s560_s16, 1 }
   0x6   : > { %169 = sbr.rel (%p166_p2) target bundleno = 265 (0x109), region = 32 }
   0xb   : > { %v258_v0 = vld [vmem:[%s903_s2 + $0xf8] sm:$0xff]  ;;  %v257_v2 = vld [vmem:[%s903_s2 + $0xf0] sm:$0xff]  ;;  %v256_v5 = vld [vmem:[%s903_s2 + $0xe8] sm:$0xff]  ;;  %s908_s16 = smov (!%p733_p3, %s560_s16), 1  ;;  %vm277_vm0 = vcmask 1040384   ;;  %vm288_vm1 = vcmask 1046528  }
   0xc   : > { %v242_v1 = vld [vmem:[%s903_s2 + $0x78] sm:$0xff]  ;;  %578 = vmatprep.subr.mxu0 %v258_v0  ;;  %v241_v4 = vld [vmem:[%s903_s2 + $0x70] sm:$0xff]  ;;  %v240_v7 = vld [vmem:[%s903_s2 + $0x68] sm:$0xff]  ;;  %s576_s30 = sshll.u32 %s908_s16, 4  ;;  %vm296_vm2 = vcmask 1045504  }
   0xd   : > { %v274_v3 = vld [vmem:[%s903_s2 + $0x178] sm:$0xff]  ;;  %579 = vmatpush3.msra.mxu0 %v242_v1  ;;  %v273_v6 = vld [vmem:[%s903_s2 + $0x170] sm:$0xff]  ;;  %v272_v8 = vld [vmem:[%s903_s2 + $0x168] sm:$0xff]  ;;  %s199_s17 = scalar_lea.vmem %s901_s0, %s576_s30  ;;  %s204_s5 = scalar_lea.vmem %s904_s3, %s576_s30 }
   0xe   : > { %634 = vmatprep.subr.mxu1 %v274_v3  ;;  %580 = vmatprep.subr.mxu0 %v257_v2  ;;  %v255_v9 = vld [vmem:[%s903_s2 + $0xe0] sm:$0xff]  ;;  %v254_v12 = vld [vmem:[%s903_s2 + $0xd8] sm:$0xff]  ;;  %v253_v15 = vld [vmem:[%s903_s2 + $0xd0] sm:$0xff]  ;;  %s569_s30 = sshll.u32 %s908_s16, 1 }
   0xf   : > { %635 = vmatpush3.msra.mxu1 %v274_v3  ;;  %581 = vmatpush3.msra.mxu0 %v241_v4  ;;  %v239_v10 = vld [vmem:[%s903_s2 + $0x60] sm:$0xff]  ;;  %v238_v13 = vld [vmem:[%s903_s2 + $0x58] sm:$0xff]  ;;  %v237_v16 = vld [vmem:[%s903_s2 + $0x50] sm:$0xff]  ;;  %s208_s8 = scalar_lea.vmem %s905_s4, %s569_s30 }
  0x10   : > { %636 = vmatprep.subr.mxu1 %v273_v6  ;;  %582 = vmatprep.subr.mxu0 %v256_v5  ;;  %v271_v11 = vld [vmem:[%s903_s2 + $0x160] sm:$0xff]  ;;  %v270_v14 = vld [vmem:[%s903_s2 + $0x158] sm:$0xff]  ;;  %v269_v17 = vld [vmem:[%s903_s2 + $0x150] sm:$0xff] }
  0x11   : > { %637 = vmatpush3.msra.mxu1 %v273_v6  ;;  %583 = vmatpush3.msra.mxu0 %v240_v7  ;;  %v252_v18 = vld [vmem:[%s903_s2 + $0xc8] sm:$0xff]  ;;  %v251_v21 = vld [vmem:[%s903_s2 + $0xc0] sm:$0xff]  ;;  %v250_v24 = vld [vmem:[%s903_s2 + $0xb8] sm:$0xff] }
  0x12   : > { %638 = vmatprep.subr.mxu1 %v272_v8  ;;  %584 = vmatprep.subr.mxu0 %v255_v9  ;;  %v236_v19 = vld [vmem:[%s903_s2 + $0x48] sm:$0xff]  ;;  %v235_v22 = vld [vmem:[%s903_s2 + $0x40] sm:$0xff]  ;;  %v234_v25 = vld [vmem:[%s903_s2 + $0x38] sm:$0xff] }
  0x13   : > { %639 = vmatpush3.msra.mxu1 %v272_v8  ;;  %585 = vmatpush3.msra.mxu0 %v239_v10  ;;  %v268_v20 = vld [vmem:[%s903_s2 + $0x148] sm:$0xff]  ;;  %v267_v23 = vld [vmem:[%s903_s2 + $0x140] sm:$0xff]  ;;  %v249_v26 = vld [vmem:[%s903_s2 + $0xb0] sm:$0xff] }
  0x14   : > { %640 = vmatprep.subr.mxu1 %v271_v11  ;;  %586 = vmatprep.subr.mxu0 %v254_v12  ;;  %v266_v27 = vld [vmem:[%s903_s2 + $0x138] sm:$0xff]  ;;  %v209_v28 = vld [vmem:[%s199_s17] sm:$0xff]  ;;  %v210_v29 = vld [vmem:[%s199_s17 + $0x8] sm:$0xff] }
  0x15   : > { %641 = vmatpush3.msra.mxu1 %v271_v11  ;;  %587 = vmatpush3.msra.mxu0 %v238_v13  ;;  %v570_v30 = vld [vmem:[%s902_s1] ss:$0 sm:$0xff]  ;;  %v571_v31 = vld [vmem:[%s902_s1 + $0x1] ss:$0 sm:$0xff]  ;;  %v233_v32 = vld [vmem:[%s903_s2 + $0x30] sm:$0xff] }
  0x16   : > { %642 = vmatprep.subr.mxu1 %v270_v14  ;;  %588 = vmatprep.subr.mxu0 %v253_v15  ;;  %v265_v33 = vld [vmem:[%s903_s2 + $0x130] sm:$0xff]  ;;  %v216_v34 = vmul.f32 %v570_v30, %v209_v28  ;;  %v217_v35 = vmul.f32 %v570_v30, %v210_v29  ;;  %v248_v36 = vld [vmem:[%s903_s2 + $0xa8] sm:$0xff]  ;;  %v247_v41 = vld [vmem:[%s903_s2 + $0xa0] sm:$0xff] }
  0x17   : > { %643 = vmatpush3.msra.mxu1 %v270_v14  ;;  %589 = vmatpush3.msra.mxu0 %v237_v16  ;;  %v232_v37 = vld [vmem:[%s903_s2 + $0x28] sm:$0xff]  ;;  %v231_v42 = vld [vmem:[%s903_s2 + $0x20] sm:$0xff]  ;;  %v246_v46 = vld [vmem:[%s903_s2 + $0x98] sm:$0xff] }
  0x18   : > { %644 = vmatprep.subr.mxu1 %v269_v17  ;;  %590 = vmatprep.subr.mxu0 %v252_v18  ;;  %v264_v38 = vld [vmem:[%s903_s2 + $0x128] sm:$0xff]  ;;  %v223_v39 = vadd.f32 %v571_v31, %v216_v34  ;;  %v224_v40 = vadd.f32 %v571_v31, %v217_v35  ;;  %v263_v43 = vld [vmem:[%s903_s2 + $0x120] sm:$0xff]  ;;  %v230_v47 = vld [vmem:[%s903_s2 + $0x18] sm:$0xff] }
  0x19   : > { %645 = vmatpush3.msra.mxu1 %v269_v17  ;;  %591 = vmatpush3.msra.mxu0 %v236_v19  ;;  %v262_v48 = vld [vmem:[%s903_s2 + $0x118] sm:$0xff]  ;;  %v245_v51 = vld [vmem:[%s903_s2 + $0x90] sm:$0xff]  ;;  %v244_v57 = vld [vmem:[%s903_s2 + $0x88] sm:$0xff] }
  0x1a   : > { %646 = vmatprep.subr.mxu1 %v268_v20  ;;  %592 = vmatprep.subr.mxu0 %v251_v21  ;;  %v225_v44 = vmax.f32 %v223_v39, 0.0  ;;  %v226_v45 = vmax.f32 %v224_v40, 0.0  ;;  %v229_v52 = vld [vmem:[%s903_s2 + $0x10] sm:$0xff]  ;;  %v228_v60 = vld [vmem:[%s903_s2 + $0x8] sm:$0xff]  ;;  %v243_v0 = vld [vmem:[%s903_s2 + $0x80] sm:$0xff] }
  0x1b   : > { %647 = vmatpush3.msra.mxu1 %v268_v20  ;;  %593 = vmatpush3.msra.mxu0 %v235_v22  ;;  %v261_v53 = vld [vmem:[%s903_s2 + $0x110] sm:$0xff]  ;;  %v260_v61 = vld [vmem:[%s903_s2 + $0x108] sm:$0xff]  ;;  %v227_v4 = vld [vmem:[%s903_s2] sm:$0xff] }
  0x1c   : > { %648 = vmatprep.subr.mxu1 %v267_v23  ;;  %594 = vmatprep.subr.mxu0 %v250_v24  ;;  %v278_v49 = vrot.slane %v225_v44, 7  ;;  %v279_v50 = vrot.slane %v226_v45, 7  ;;  %vm572_vm3 = vmneg %vm277_vm0  ;;  %v259_v5 = vld [vmem:[%s903_s2 + $0x100] sm:$0xff] }
  0x1d   : > { %649 = vmatpush3.msra.mxu1 %v267_v23  ;;  %595 = vmatpush3.msra.mxu0 %v234_v25 }
  0x1e   : > { %650 = vmatprep.subr.mxu1 %v266_v27  ;;  %596 = vmatprep.subr.mxu0 %v249_v26  ;;  %v280_v54 = vsel %vm277_vm0, %v278_v49, %v279_v50  ;;  %v284_v55 = vsel %vm277_vm0, 0.0, %v278_v49  ;;  %v285_v56 = vsel %vm277_vm0, %v279_v50, 0.0 }
  0x1f   : > { %651 = vmatpush3.msra.mxu1 %v266_v27  ;;  %597 = vmatpush3.msra.mxu0 %v233_v32  ;;  %v289_v58 = vrot.slane %v284_v55, 1  ;;  %v290_v59 = vrot.slane %v280_v54, 1  ;;  %v297_v62 = vrot.slane %v284_v55, 2  ;;  %v298_v63 = vrot.slane %v280_v54, 2 }
  0x20   : > { %652 = vmatprep.subr.mxu1 %v265_v33  ;;  %598 = vmatprep.subr.mxu0 %v248_v36  ;;  %v300_v2 = vrot.slane %v285_v56, 2  ;;  %v292_v3 = vrot.slane %v285_v56, 1 }
  0x21   : > { %653 = vmatpush3.msra.mxu1 %v265_v33  ;;  %599 = vmatpush3.msra.mxu0 %v232_v37  ;;  %v291_v1 = vsel %vm288_vm1, %v289_v58, %v290_v59  ;;  %v299_v6 = vsel %vm296_vm2, %v297_v62, %v298_v63 }
  0x22   : > { %654 = vmatprep.subr.mxu1 %v264_v38  ;;  %600 = vmatprep.subr.mxu0 %v247_v41  ;;  %v301_v7 = vsel %vm296_vm2, %v298_v63, %v300_v2  ;;  %v293_v8 = vsel %vm288_vm1, %v290_v59, %v292_v3 }
  0x23   : > { %655 = vmatpush3.msra.mxu1 %v264_v38  ;;  %601 = vmatpush3.msra.mxu0 %v231_v42 }
  0x24   : > { %656 = vmatprep.subr.mxu1 %v263_v43  ;;  %602 = vmatprep.subr.mxu0 %v246_v46 }
  0x25   : > { %657 = vmatpush3.msra.mxu1 %v263_v43  ;;  %603 = vmatpush3.msra.mxu0 %v230_v47 }
  0x26   : > { %658 = vmatprep.subr.mxu1 %v262_v48  ;;  %604 = vmatprep.subr.mxu0 %v245_v51 }
  0x27   : > { %659 = vmatpush3.msra.mxu1 %v262_v48  ;;  %605 = vmatpush3.msra.mxu0 %v229_v52 }
  0x28   : > { %660 = vmatprep.subr.mxu1 %v261_v53  ;;  %606 = vmatprep.subr.mxu0 %v244_v57 }
  0x29   : > { %661 = vmatpush3.msra.mxu1 %v261_v53  ;;  %607 = vmatpush3.msra.mxu0 %v228_v60 }
  0x2a   : > { %662 = vmatprep.subr.mxu1 %v260_v61  ;;  %608 = vmatprep.subr.mxu0 %v243_v0 }
  0x2b   : > { %368 = vmatprep.mubr.f32.mxu0 %v291_v1  ;;  %609 = vmatpush3.msra.mxu0 %v227_v4 }
  0x2c   : > { %663 = vmatpush3.msra.mxu1 %v260_v61  ;;  %573 = vmatmul.mubr.msk.f32.vlgmr.msra.gmra.mxu0 %vm572_vm3, %v278_v49 }
  0x2d   : > { %664 = vmatprep.subr.mxu1 %v259_v5  ;;  %666 = vmatprep.mubr.f32.mxu1 %v299_v6 }
  0x2e   : > { %665 = vmatpush3.msra.mxu1 %v259_v5  ;;  %373 = vmatprep.mubr.f32.mxu0 %v293_v8 }
  0x2f   : > { %667 = vmatmul.mubr.f32.vlgmr.msra.gmra.mxu1 %v301_v7 }
  0x30   : > { %374 = vmatmul.mubr.f32.gmra.mxu0 %v280_v54 }
  0xec   : > { %v610_v9 = vpop.f32.mrf.mxu0 }
  0xee   : > { %v611_v10 = vpop.f32.mrf.mxu0 }
  0xef   : > { %v668_v11 = vpop.f32.mrf.mxu1  ;;  %v612_v12 = vadd.f32 %v611_v10, %v610_v9 }
  0xf0   : > { %v613_v13 = vpop.f32.mrf.mxu0 }
  0xf1   : > { %v445_v14 = vpop.f32.mrf.mxu1 }
  0xf2   : > { %v446_v15 = vadd.f32 %v612_v12, %v445_v14  ;;  %v614_v16 = vpop.f32.mrf.mxu0 }
  0xf3   : > { %v615_v17 = vadd.f32 %v614_v16, %v613_v13 }
  0xf4   : > { %454 = vst [vmem:[%s204_s5] sm:$0xff] %v446_v15  ;;  %v463_v19 = vmul.f32 %v446_v15, %v446_v15 }
  0xf5   : > { %v451_v18 = vadd.f32 %v668_v11, %v615_v17 }
  0xf7   : > { %455 = vst [vmem:[%s204_s5 + $0x8] sm:$0xff] %v451_v18  ;;  %v456_v20 = vadd.f32 %v451_v18, %v446_v15  ;;  %v464_v21 = vmul.f32 %v451_v18, %v451_v18 }
  0xf9   : > { %v457_v22 = vrot.slane %v456_v20, 4  ;;  %v465_v23 = vadd.f32 %v464_v21, %v463_v19 }
  0xfb   : > { %v458_v24 = vadd.f32 %v457_v22, %v456_v20  ;;  %v466_v25 = vrot.slane %v465_v23, 4 }
  0xfd   : > { %v459_v26 = vrot.slane %v458_v24, 2  ;;  %v467_v27 = vadd.f32 %v466_v25, %v465_v23 }
  0xff   : > { %v460_v28 = vadd.f32 %v459_v26, %v458_v24  ;;  %v468_v29 = vrot.slane %v467_v27, 2 }
 0x101   : > { %v461_v30 = vrot.slane %v460_v28, 1  ;;  %v469_v31 = vadd.f32 %v468_v29, %v467_v27 }
 0x103   : > { %v470_v32 = vrot.slane %v469_v31, 1  ;;  %v462_v33 = vadd.f32 %v461_v30, %v460_v28 }
 0x105   : > { %v471_v34 = vadd.f32 %v470_v32, %v469_v31 }
 0x107   : > { %v472_v35 = vsel %vm277_vm0, %v462_v33, %v471_v34 }
 0x108   : > { %473 = vst [vmem:[%s208_s8] sm:$0x3] %v472_v35 }
 0x109 PF: > { %s15_s15 = sadd.s32 1, %s683_s15  }
 0x10a   : > { %p12_p4 = scmp.ge.s32.totalorder %s15_s15, 4  }
 0x10c   :  { %14 = sbr.rel (!%p12_p4) target bundleno = 1 (0x1), region = 74 }

// kernel: residual_block_1d.3
= control target key start
LH: loop header
LB: loop body
LE: loop exit
PB: predicated region body
PF: predicated region fallthrough
CT: control target
= control target key end

     0   :  { %s660_s12 = smov 0   ;;  %s850_s0 = inlined_call_operand.vmem [shape: f32[2,16,128], index: 0, kind: input, shape index: {}]   ;;  %s851_s1 = inlined_call_operand.vmem [shape: f32[384,128], index: 1, kind: input, shape index: {}]   ;;  %s852_s2 = inlined_call_operand.vmem [shape: f32[2,16,128], index: 2, kind: output, shape index: {0}]   ;;  %s853_s3 = inlined_call_operand.vmem [shape: f32[2,2,128], index: 3, kind: output, shape index: {1}]  }
   0x1 LB: > { %s517_s13 = sadd.s32 4294967295, %s638_s12   ;;  %p521_p0 = scmp.ge.s32.totalorder %s638_s12, 1  ;;  %s638_s12 = sphi %s660_s12, %s14_s12  }
   0x2   : > { %p140_p1 = scmp.lt.s32.totalorder %s638_s12, 3 }
   0x4   : > { %p141_p2 = pnand %p521_p0, %p140_p1 }
   0x5   : > { %p683_p3 = scmp.lt.s32.totalorder (!%p141_p2), %s517_s13, 1 }
   0x6   : > { %144 = sbr.rel (%p141_p2) target bundleno = 265 (0x109), region = 28 }
   0xb   : > { %v215_v0 = vld [vmem:[%s851_s1 + $0xf8] sm:$0xff]  ;;  %v214_v2 = vld [vmem:[%s851_s1 + $0xf0] sm:$0xff]  ;;  %v213_v5 = vld [vmem:[%s851_s1 + $0xe8] sm:$0xff]  ;;  %s856_s13 = smov (!%p683_p3, %s517_s13), 1  ;;  %vm234_vm0 = vcmask 1040384   ;;  %vm245_vm1 = vcmask 1046528  }
   0xc   : > { %v199_v1 = vld [vmem:[%s851_s1 + $0x78] sm:$0xff]  ;;  %533 = vmatprep.subr.mxu0 %v215_v0  ;;  %v198_v4 = vld [vmem:[%s851_s1 + $0x70] sm:$0xff]  ;;  %v197_v7 = vld [vmem:[%s851_s1 + $0x68] sm:$0xff]  ;;  %s531_s26 = sshll.u32 %s856_s13, 4  ;;  %vm253_vm2 = vcmask 1045504  }
   0xd   : > { %v231_v3 = vld [vmem:[%s851_s1 + $0x178] sm:$0xff]  ;;  %534 = vmatpush3.msra.mxu0 %v199_v1  ;;  %v230_v6 = vld [vmem:[%s851_s1 + $0x170] sm:$0xff]  ;;  %v229_v8 = vld [vmem:[%s851_s1 + $0x168] sm:$0xff]  ;;  %s172_s10 = scalar_lea.vmem %s850_s0, %s531_s26  ;;  %s177_s19 = scalar_lea.vmem %s852_s2, %s531_s26 }
   0xe   : > { %589 = vmatprep.subr.mxu1 %v231_v3  ;;  %535 = vmatprep.subr.mxu0 %v214_v2  ;;  %v212_v9 = vld [vmem:[%s851_s1 + $0xe0] sm:$0xff]  ;;  %v211_v12 = vld [vmem:[%s851_s1 + $0xd8] sm:$0xff]  ;;  %v210_v15 = vld [vmem:[%s851_s1 + $0xd0] sm:$0xff]  ;;  %s526_s26 = sshll.u32 %s856_s13, 1 }
   0xf   : > { %590 = vmatpush3.msra.mxu1 %v231_v3  ;;  %536 = vmatpush3.msra.mxu0 %v198_v4  ;;  %v196_v10 = vld [vmem:[%s851_s1 + $0x60] sm:$0xff]  ;;  %v195_v13 = vld [vmem:[%s851_s1 + $0x58] sm:$0xff]  ;;  %v194_v16 = vld [vmem:[%s851_s1 + $0x50] sm:$0xff]  ;;  %s181_s22 = scalar_lea.vmem %s853_s3, %s526_s26 }
  0x10   : > { %591 = vmatprep.subr.mxu1 %v230_v6  ;;  %537 = vmatprep.subr.mxu0 %v213_v5  ;;  %v228_v11 = vld [vmem:[%s851_s1 + $0x160] sm:$0xff]  ;;  %v227_v14 = vld [vmem:[%s851_s1 + $0x158] sm:$0xff]  ;;  %v226_v17 = vld [vmem:[%s851_s1 + $0x150] sm:$0xff] }
  0x11   : > { %592 = vmatpush3.msra.mxu1 %v230_v6  ;;  %538 = vmatpush3.msra.mxu0 %v197_v7  ;;  %v209_v18 = vld [vmem:[%s851_s1 + $0xc8] sm:$0xff]  ;;  %v208_v21 = vld [vmem:[%s851_s1 + $0xc0] sm:$0xff]  ;;  %v207_v24 = vld [vmem:[%s851_s1 + $0xb8] sm:$0xff] }
  0x12   : > { %593 = vmatprep.subr.mxu1 %v229_v8  ;;  %539 = vmatprep.subr.mxu0 %v212_v9  ;;  %v193_v19 = vld [vmem:[%s851_s1 + $0x48] sm:$0xff]  ;;  %v192_v22 = vld [vmem:[%s851_s1 + $0x40] sm:$0xff]  ;;  %v191_v25 = vld [vmem:[%s851_s1 + $0x38] sm:$0xff] }
  0x13   : > { %594 = vmatpush3.msra.mxu1 %v229_v8  ;;  %540 = vmatpush3.msra.mxu0 %v196_v10  ;;  %v225_v20 = vld [vmem:[%s851_s1 + $0x148] sm:$0xff]  ;;  %v224_v23 = vld [vmem:[%s851_s1 + $0x140] sm:$0xff]  ;;  %v223_v26 = vld [vmem:[%s851_s1 + $0x138] sm:$0xff] }
  0x14   : > { %595 = vmatprep.subr.mxu1 %v228_v11  ;;  %541 = vmatprep.subr.mxu0 %v211_v12  ;;  %v182_v27 = vld [vmem:[%s172_s10] sm:$0xff]  ;;  %v206_v28 = vld [vmem:[%s851_s1 + $0xb0] sm:$0xff]  ;;  %v183_v29 = vld [vmem:[%s172_s10 + $0x8] sm:$0xff] }
  0x15   : > { %596 = vmatpush3.msra.mxu1 %v228_v11  ;;  %542 = vmatpush3.msra.mxu0 %v195_v13  ;;  %v190_v30 = vld [vmem:[%s851_s1 + $0x30] sm:$0xff]  ;;  %v772_v32 = vrot.slane %v182_v27, 7  ;;  %v236_v33 = vrot.slane %v183_v29, 7  ;;  %v205_v34 = vld [vmem:[%s851_s1 + $0xa8] sm:$0xff]  ;;  %v204_v37 = vld [vmem:[%s851_s1 + $0xa0] sm:$0xff] }
  0x16   : > { %597 = vmatprep.subr.mxu1 %v227_v14  ;;  %543 = vmatprep.subr.mxu0 %v210_v15  ;;  %v222_v31 = vld [vmem:[%s851_s1 + $0x130] sm:$0xff]  ;;  %v189_v35 = vld [vmem:[%s851_s1 + $0x28] sm:$0xff]  ;;  %v188_v38 = vld [vmem:[%s851_s1 + $0x20] sm:$0xff] }
  0x17   : > { %598 = vmatpush3.msra.mxu1 %v227_v14  ;;  %544 = vmatpush3.msra.mxu0 %v194_v16  ;;  %v221_v36 = vld [vmem:[%s851_s1 + $0x128] sm:$0xff]  ;;  %v220_v39 = vld [vmem:[%s851_s1 + $0x120] sm:$0xff]  ;;  %v237_v40 = vsel %vm234_vm0, %v772_v32, %v236_v33  ;;  %v241_v41 = vsel %vm234_vm0, 0.0, %v772_v32  ;;  %v203_v42 = vld [vmem:[%s851_s1 + $0x98] sm:$0xff]  ;;  %v242_v50 = vsel %vm234_vm0, %v236_v33, 0.0 }
  0x18   : > { %599 = vmatprep.subr.mxu1 %v226_v17  ;;  %545 = vmatprep.subr.mxu0 %v209_v18  ;;  %v187_v43 = vld [vmem:[%s851_s1 + $0x18] sm:$0xff]  ;;  %v202_v45 = vld [vmem:[%s851_s1 + $0x90] sm:$0xff]  ;;  %v246_v46 = vrot.slane %v241_v41, 1  ;;  %v247_v47 = vrot.slane %v237_v40, 1  ;;  %v201_v51 = vld [vmem:[%s851_s1 + $0x88] sm:$0xff]  ;;  %v254_v54 = vrot.slane %v241_v41, 2 }
  0x19   : > { %600 = vmatpush3.msra.mxu1 %v226_v17  ;;  %546 = vmatpush3.msra.mxu0 %v193_v19  ;;  %v219_v44 = vld [vmem:[%s851_s1 + $0x118] sm:$0xff]  ;;  %v186_v48 = vld [vmem:[%s851_s1 + $0x10] sm:$0xff]  ;;  %v185_v52 = vld [vmem:[%s851_s1 + $0x8] sm:$0xff]  ;;  %v255_v55 = vrot.slane %v237_v40, 2  ;;  %v257_v58 = vrot.slane %v242_v50, 2  ;;  %v249_v59 = vrot.slane %v242_v50, 1 }
  0x1a   : > { %601 = vmatprep.subr.mxu1 %v225_v20  ;;  %547 = vmatprep.subr.mxu0 %v208_v21  ;;  %v218_v49 = vld [vmem:[%s851_s1 + $0x110] sm:$0xff]  ;;  %v217_v53 = vld [vmem:[%s851_s1 + $0x108] sm:$0xff]  ;;  %v200_v56 = vld [vmem:[%s851_s1 + $0x80] sm:$0xff]  ;;  %v248_v57 = vsel %vm245_vm1, %v246_v46, %v247_v47 }
  0x1b   : > { %602 = vmatpush3.msra.mxu1 %v225_v20  ;;  %548 = vmatpush3.msra.mxu0 %v192_v22  ;;  %v184_v60 = vld [vmem:[%s851_s1] sm:$0xff]  ;;  %vm527_vm3 = vmneg %vm234_vm0  ;;  %v256_v62 = vsel %vm253_vm2, %v254_v54, %v255_v55  ;;  %v258_v63 = vsel %vm253_vm2, %v255_v55, %v257_v58  ;;  %v250_v0 = vsel %vm245_vm1, %v247_v47, %v249_v59 }
  0x1c   : > { %603 = vmatprep.subr.mxu1 %v224_v23  ;;  %549 = vmatprep.subr.mxu0 %v207_v24  ;;  %v216_v61 = vld [vmem:[%s851_s1 + $0x100] sm:$0xff] }
  0x1d   : > { %604 = vmatpush3.msra.mxu1 %v224_v23  ;;  %550 = vmatpush3.msra.mxu0 %v191_v25 }
  0x1e   : > { %605 = vmatprep.subr.mxu1 %v223_v26  ;;  %551 = vmatprep.subr.mxu0 %v206_v28 }
  0x1f   : > { %606 = vmatpush3.msra.mxu1 %v223_v26  ;;  %552 = vmatpush3.msra.mxu0 %v190_v30 }
  0x20   : > { %607 = vmatprep.subr.mxu1 %v222_v31  ;;  %553 = vmatprep.subr.mxu0 %v205_v34 }
  0x21   : > { %608 = vmatpush3.msra.mxu1 %v222_v31  ;;  %554 = vmatpush3.msra.mxu0 %v189_v35 }
  0x22   : > { %609 = vmatprep.subr.mxu1 %v221_v36  ;;  %555 = vmatprep.subr.mxu0 %v204_v37 }
  0x23   : > { %610 = vmatpush3.msra.mxu1 %v221_v36  ;;  %556 = vmatpush3.msra.mxu0 %v188_v38 }
  0x24   : > { %611 = vmatprep.subr.mxu1 %v220_v39  ;;  %557 = vmatprep.subr.mxu0 %v203_v42 }
  0x25   : > { %612 = vmatpush3.msra.mxu1 %v220_v39  ;;  %558 = vmatpush3.msra.mxu0 %v187_v43 }
  0x26   : > { %613 = vmatprep.subr.mxu1 %v219_v44  ;;  %559 = vmatprep.subr.mxu0 %v202_v45 }
  0x27   : > { %614 = vmatpush3.msra.mxu1 %v219_v44  ;;  %560 = vmatpush3.msra.mxu0 %v186_v48 }
  0x28   : > { %615 = vmatprep.subr.mxu1 %v218_v49  ;;  %561 = vmatprep.subr.mxu0 %v201_v51 }
  0x29   : > { %616 = vmatpush3.msra.mxu1 %v218_v49  ;;  %562 = vmatpush3.msra.mxu0 %v185_v52 }
  0x2a   : > { %617 = vmatprep.subr.mxu1 %v217_v53  ;;  %563 = vmatprep.subr.mxu0 %v200_v56 }
  0x2b   : > { %325 = vmatprep.mubr.f32.mxu0 %v248_v57  ;;  %564 = vmatpush3.msra.mxu0 %v184_v60 }
  0x2c   : > { %618 = vmatpush3.msra.mxu1 %v217_v53  ;;  %528 = vmatmul.mubr.msk.f32.vlgmr.msra.gmra.mxu0 %vm527_vm3, %v772_v32 }
  0x2d   : > { %619 = vmatprep.subr.mxu1 %v216_v61  ;;  %621 = vmatprep.mubr.f32.mxu1 %v256_v62 }
  0x2e   : > { %620 = vmatpush3.msra.mxu1 %v216_v61  ;;  %330 = vmatprep.mubr.f32.mxu0 %v250_v0 }
  0x2f   : > { %622 = vmatmul.mubr.f32.vlgmr.msra.gmra.mxu1 %v258_v63 }
  0x30   : > { %331 = vmatmul.mubr.f32.gmra.mxu0 %v237_v40 }
  0xec   : > { %v565_v1 = vpop.f32.mrf.mxu0 }
  0xee   : > { %v566_v2 = vpop.f32.mrf.mxu0 }
  0xef   : > { %v623_v3 = vpop.f32.mrf.mxu1  ;;  %v567_v4 = vadd.f32 %v566_v2, %v565_v1 }
  0xf0   : > { %v568_v5 = vpop.f32.mrf.mxu0 }
  0xf1   : > { %v402_v6 = vpop.f32.mrf.mxu1 }
  0xf2   : > { %v403_v7 = vadd.f32 %v567_v4, %v402_v6  ;;  %v569_v8 = vpop.f32.mrf.mxu0 }
  0xf3   : > { %v570_v9 = vadd.f32 %v569_v8, %v568_v5 }
  0xf4   : > { %411 = vst [vmem:[%s177_s19] sm:$0xff] %v403_v7  ;;  %v420_v11 = vmul.f32 %v403_v7, %v403_v7 }
  0xf5   : > { %v408_v10 = vadd.f32 %v623_v3, %v570_v9 }
  0xf7   : > { %412 = vst [vmem:[%s177_s19 + $0x8] sm:$0xff] %v408_v10  ;;  %v413_v12 = vadd.f32 %v408_v10, %v403_v7  ;;  %v421_v13 = vmul.f32 %v408_v10, %v408_v10 }
  0xf9   : > { %v414_v14 = vrot.slane %v413_v12, 4  ;;  %v422_v15 = vadd.f32 %v421_v13, %v420_v11 }
  0xfb   : > { %v415_v16 = vadd.f32 %v414_v14, %v413_v12  ;;  %v423_v17 = vrot.slane %v422_v15, 4 }
  0xfd   : > { %v416_v18 = vrot.slane %v415_v16, 2  ;;  %v424_v19 = vadd.f32 %v423_v17, %v422_v15 }
  0xff   : > { %v417_v20 = vadd.f32 %v416_v18, %v415_v16  ;;  %v425_v21 = vrot.slane %v424_v19, 2 }
 0x101   : > { %v418_v22 = vrot.slane %v417_v20, 1  ;;  %v426_v23 = vadd.f32 %v425_v21, %v424_v19 }
 0x103   : > { %v427_v24 = vrot.slane %v426_v23, 1  ;;  %v419_v25 = vadd.f32 %v418_v22, %v417_v20 }
 0x105   : > { %v428_v26 = vadd.f32 %v427_v24, %v426_v23 }
 0x107   : > { %v429_v27 = vsel %vm234_vm0, %v419_v25, %v428_v26 }
 0x108   : > { %430 = vst [vmem:[%s181_s22] sm:$0x3] %v429_v27 }
 0x109 PF: > { %s14_s12 = sadd.s32 1, %s638_s12  }
 0x10a   : > { %p11_p4 = scmp.ge.s32.totalorder %s14_s12, 4  }
 0x10c   :  { %13 = sbr.rel (!%p11_p4) target bundleno = 1 (0x1), region = 70 }

</bundles_post_ra>
